<compile_context>
chip_gen: v5e
topology: v5e:2x2
jax: 0.10.0
libtpu: 0.0.40
codegen_flags: <defaults>
</compile_context>

<pallas_src>
import numpy as np

import jax
import jax.numpy as jnp
from jax import lax
from jax.experimental import pallas as pl
from jax.experimental.pallas import tpu as pltpu


def _round_up(n, m):
    return ((n + m - 1) // m) * m


def dueling_dqn_kernel(x_ref, w1_ref, b1_ref, w2_ref, b2_ref, wq_ref, bq_ref,
                       o_ref):
    """One batch tile of the DuelingDQN forward pass; all contractions on MXU.

    x_ref  : (TB, 16)      flattened 4x4 input (row-major pixels)
    w1_ref : (16, 512)     conv1 folded into the conv2 im2col layout,
                           cols = (conv2 pos[4], conv2 tap[4], conv1 ch[32])
    b1_ref : (1, 512)      conv1 bias broadcast into the same column layout (f32)
    w2_ref : (128, 64)     conv2 weight, K order = (kh, kw, cin)
    b2_ref : (1, 64)       conv2 bias (f32)
    wq_ref : (4, 64, 128)  fused dueling-head weight per conv2 output position,
                           lane-padded 4 -> 128 (cols 0..3 = actions)
    bq_ref : (1, 128)      fused dueling-head bias, lane-padded
    o_ref  : (TB, 128)     q-values in cols 0..3, zeros elsewhere
    """
    tb = x_ref.shape[0]
    x = x_ref[...]

    # ---- conv1 + conv2-im2col gather as one (TB, 16) @ (16, 512) MXU dot ----
    h1 = jnp.dot(x, w1_ref[...], preferred_element_type=jnp.float32)
    h1 = jnp.maximum(h1 + b1_ref[...], 0.0)            # (TB, 512) f32
    h1 = h1.astype(w2_ref.dtype)

    w2 = w2_ref[...]
    b2 = b2_ref[...]
    wq = wq_ref[...]

    # ---- conv2 (K=128) + fused dueling head, per conv2 output position ------
    acc = jnp.zeros((tb, 128), jnp.float32)
    for pos in range(4):
        row = h1[:, pos * 128:(pos + 1) * 128]          # tile-aligned lane slice
        h2 = jnp.dot(row, w2, preferred_element_type=jnp.float32)
        h2 = jnp.maximum(h2 + b2, 0.0).astype(wq.dtype)  # (TB, 64)
        acc = acc + jnp.dot(h2, wq[pos],
                            preferred_element_type=jnp.float32)

    o_ref[...] = acc + bq_ref[...]                      # lane-dense (TB, 128) store


def _conv1_im2col_matrix(w1, compute_dtype):
    """Fold conv1 + the conv2 im2col gather into one (16, 512) matrix.

    Column (op*128 + t*32 + c) holds the conv1-channel-c response at conv1
    output position (oi+di2, oj+dj2), where op = oi*2+oj is the conv2 output
    position and t = di2*2+dj2 the conv2 kernel tap.  Pure structural algebra
    (no model compute beyond re-laying out w1).
    """
    # (conv1 pos, conv1 tap) -> flat input pixel index
    pix_for = np.zeros((9, 4), np.int32)
    for p1i in range(3):
        for p1j in range(3):
            for di in range(2):
                for dj in range(2):
                    pix_for[p1i * 3 + p1j, di * 2 + dj] = (p1i + di) * 4 + (p1j + dj)
    # (conv2 out pos, conv2 tap) -> conv1 output position index
    p1pos_for = np.zeros((4, 4), np.int32)
    for oi in range(2):
        for oj in range(2):
            for di2 in range(2):
                for dj2 in range(2):
                    p1pos_for[oi * 2 + oj, di2 * 2 + dj2] = (oi + di2) * 3 + (oj + dj2)

    sel = (np.arange(16)[:, None, None] == pix_for[None]).astype(np.float32)  # (16,9,4)
    w1_taps = jnp.transpose(w1.reshape(32, 4), (1, 0)).astype(jnp.float32)    # (4,32), taps=(kh,kw)
    w_c1 = jnp.einsum('pqt,tc->pqc', jnp.asarray(sel), w1_taps)               # (16,9,32)
    w1_full = w_c1[:, p1pos_for.reshape(-1), :].reshape(16, 512)              # (16,512)
    return w1_full.astype(compute_dtype)


def dueling_dqn_forward(x, params, *, compute_dtype=jnp.float32,
                        max_batch_tile=512):
    """x: (B, 1, 4, 4) NCHW, params in PyTorch layouts (OIHW / (out, in))."""
    B = x.shape[0]
    (w1, b1, w2, b2, wv, bv, wa, ba) = params

    # --- input: flat (B, 16) row-major pixels (minimal HBM traffic) ----------
    x_flat = x.reshape(B, 16).astype(compute_dtype)

    # --- weight repacks (structural glue only, no model compute) -------------
    w1_k = _conv1_im2col_matrix(w1, compute_dtype)                 # (16, 512)
    b1_k = jnp.tile(b1, 16).reshape(1, 512).astype(jnp.float32)    # matches col layout
    w2_k = jnp.transpose(w2, (2, 3, 1, 0)).reshape(128, 64)        # K=(kh,kw,cin)
    w2_k = w2_k.astype(compute_dtype)
    b2_k = b2.reshape(1, 64).astype(jnp.float32)

    # Dueling head folded into a single linear layer (exact algebra):
    #   q = value + adv - mean(adv) = h @ Wq^T + bq
    #   Wq[a] = wv[0] + wa[a] - mean_a(wa) ;  bq[a] = bv[0] + ba[a] - mean(ba)
    wq_full = wv + wa - jnp.mean(wa, axis=0, keepdims=True)        # (4, 256), (C,H,W) order
    bq_full = bv + ba - jnp.mean(ba)                               # (4,)
    # (a, c*4 + oh*2 + ow) -> (pos = oh*2+ow, c, a); lane-pad actions 4 -> 128.
    wq_k = jnp.transpose(wq_full.reshape(4, 64, 2, 2), (2, 3, 1, 0)).reshape(4, 64, 4)
    wq_k = jnp.pad(wq_k, ((0, 0), (0, 0), (0, 124))).astype(compute_dtype)
    bq_k = jnp.pad(bq_full, (0, 124)).reshape(1, 128).astype(jnp.float32)

    # --- batch tiling: pad B so it splits into 8-aligned tiles ----------------
    tb = min(_round_up(B, 8), max_batch_tile)                      # multiple of 8
    bp = _round_up(B, tb)
    x_flat = jnp.pad(x_flat, ((0, bp - B), (0, 0)))
    grid = (bp // tb,)

    def full(shape):                                               # VMEM-resident weights
        return pl.BlockSpec(shape, lambda i: (0,) * len(shape))

    out = pl.pallas_call(
        dueling_dqn_kernel,
        out_shape=jax.ShapeDtypeStruct((bp, 128), jnp.float32),
        grid=grid,
        in_specs=[
            pl.BlockSpec((tb, 16), lambda i: (i, 0)),              # flat input
            full((16, 512)), full((1, 512)),                       # fused conv1 w, b
            full((128, 64)), full((1, 64)),                        # conv2 w, b
            full((4, 64, 128)), full((1, 128)),                    # fused head w, b
        ],
        out_specs=pl.BlockSpec((tb, 128), lambda i: (i, 0)),
        compiler_params=pltpu.CompilerParams(
            dimension_semantics=("parallel",),
            vmem_limit_bytes=32 * 1024 * 1024,
        ),
    )(x_flat, w1_k, b1_k, w2_k, b2_k, wq_k, bq_k)
    return out[:B, :4]


def dueling_dqn_reference(x, params):
    """Pure-JAX reference with PyTorch semantics (NCHW, OIHW weights)."""
    (w1, b1, w2, b2, wv, bv, wa, ba) = params
    dn = ('NCHW', 'OIHW', 'NCHW')
    h = lax.conv_general_dilated(x, w1, (1, 1), 'VALID', dimension_numbers=dn)
    h = jnp.maximum(h + b1[None, :, None, None], 0.0)
    h = lax.conv_general_dilated(h, w2, (1, 1), 'VALID', dimension_numbers=dn)
    h = jnp.maximum(h + b2[None, :, None, None], 0.0)
    hf = h.reshape(h.shape[0], -1)                     # (B, 256) in (C, H, W) order
    value = hf @ wv.T + bv
    advantage = hf @ wa.T + ba
    return value + advantage - jnp.mean(advantage, axis=1, keepdims=True)


if __name__ == "__main__":
    key = jax.random.PRNGKey(0)
    ks = jax.random.split(key, 9)
    B = 2
    x = jax.random.normal(ks[0], (B, 1, 4, 4), jnp.float32)

    # Deterministic synthetic parameters (PyTorch shapes: OIHW / (out, in)).
    w1 = jax.random.normal(ks[1], (32, 1, 2, 2), jnp.float32) * 0.1
    b1 = jax.random.normal(ks[2], (32,), jnp.float32) * 0.1
    w2 = jax.random.normal(ks[3], (64, 32, 2, 2), jnp.float32) * 0.1
    b2 = jax.random.normal(ks[4], (64,), jnp.float32) * 0.1
    wv = jax.random.normal(ks[5], (1, 256), jnp.float32) * 0.1
    bv = jax.random.normal(ks[6], (1,), jnp.float32) * 0.1
    wa = jax.random.normal(ks[7], (4, 256), jnp.float32) * 0.1
    ba = jax.random.normal(ks[8], (4,), jnp.float32) * 0.1
    params = (w1, b1, w2, b2, wv, bv, wa, ba)

    q = jax.block_until_ready(dueling_dqn_forward(x, params))
    q_ref = dueling_dqn_reference(x, params)
    assert q.shape == (B, 4)
    assert jnp.allclose(q, q_ref, atol=1e-4, rtol=1e-4), (q, q_ref)

    # Exercise the batch-tiled grid + padding path (B not 8-aligned, 4 tiles).
    B2 = 50
    x2 = jax.random.normal(jax.random.PRNGKey(1), (B2, 1, 4, 4), jnp.float32)
    q2 = jax.block_until_ready(
        dueling_dqn_forward(x2, params, max_batch_tile=16))
    assert q2.shape == (B2, 4)
    assert jnp.allclose(q2, dueling_dqn_reference(x2, params),
                        atol=1e-4, rtol=1e-4)

    print("KERNEL_OK")
</pallas_src>

<mosaic_0001>
module attributes {stable_mosaic.version = 11 : i64} {
  func.func @dueling_dqn_kernel(%arg0: i32, %arg1: memref<8x16xf32, #tpu.memory_space<vmem>>, %arg2: memref<16x512xf32, #tpu.memory_space<vmem>>, %arg3: memref<1x512xf32, #tpu.memory_space<vmem>>, %arg4: memref<128x64xf32, #tpu.memory_space<vmem>>, %arg5: memref<1x64xf32, #tpu.memory_space<vmem>>, %arg6: memref<4x64x128xf32, #tpu.memory_space<vmem>>, %arg7: memref<1x128xf32, #tpu.memory_space<vmem>>, %arg8: memref<8x128xf32, #tpu.memory_space<vmem>>) attributes {dimension_semantics = [#tpu.dimension_semantics<parallel>], iteration_bounds = array<i64: 1>, scalar_prefetch = 0 : i64, scratch_operands = 0 : i64, tpu.core_type = #tpu.core_type<tc>, window_params = [{transform_indices = @transform_0, window_bounds = array<i64: 8, 16>}, {pipeline_mode = #tpu.pipeline_mode<synchronous>, transform_indices = @transform_1, window_bounds = array<i64: 16, 512>}, {pipeline_mode = #tpu.pipeline_mode<synchronous>, transform_indices = @transform_2, window_bounds = array<i64: 1, 512>}, {pipeline_mode = #tpu.pipeline_mode<synchronous>, transform_indices = @transform_3, window_bounds = array<i64: 128, 64>}, {pipeline_mode = #tpu.pipeline_mode<synchronous>, transform_indices = @transform_4, window_bounds = array<i64: 1, 64>}, {pipeline_mode = #tpu.pipeline_mode<synchronous>, transform_indices = @transform_5, window_bounds = array<i64: 4, 64, 128>}, {pipeline_mode = #tpu.pipeline_mode<synchronous>, transform_indices = @transform_6, window_bounds = array<i64: 1, 128>}, {transform_indices = @transform_7, window_bounds = array<i64: 8, 128>}]} {
    %c0 = arith.constant 0 : index
    %c0_0 = arith.constant 0 : index
    %0 = vector.load %arg1[%c0, %c0_0] : memref<8x16xf32, #tpu.memory_space<vmem>>, vector<8x16xf32>
    %c0_1 = arith.constant 0 : index
    %c0_2 = arith.constant 0 : index
    %1 = vector.load %arg2[%c0_1, %c0_2] : memref<16x512xf32, #tpu.memory_space<vmem>>, vector<16x512xf32>
    %cst = arith.constant dense<0.000000e+00> : vector<8x512xf32>
    %2 = tpu.matmul %0, %1, %cst {dimension_numbers = #tpu.dot_dimension_numbers<[1], [0], [0], [1], [0, 0, 1, 1], [], []>} : vector<8x16xf32>, vector<16x512xf32>, vector<8x512xf32> -> vector<8x512xf32>
    %c0_3 = arith.constant 0 : index
    %c0_4 = arith.constant 0 : index
    %3 = vector.load %arg3[%c0_3, %c0_4] : memref<1x512xf32, #tpu.memory_space<vmem>>, vector<1x512xf32>
    %4 = vector.broadcast %3 : vector<1x512xf32> to vector<8x512xf32>
    %5 = arith.addf %2, %4 : vector<8x512xf32>
    %cst_5 = arith.constant 0.000000e+00 : f32
    %6 = vector.broadcast %cst_5 : f32 to vector<8x512xf32>
    %7 = arith.maximumf %5, %6 : vector<8x512xf32>
    %c0_6 = arith.constant 0 : index
    %c0_7 = arith.constant 0 : index
    %8 = vector.load %arg4[%c0_6, %c0_7] : memref<128x64xf32, #tpu.memory_space<vmem>>, vector<128x64xf32>
    %c0_8 = arith.constant 0 : index
    %c0_9 = arith.constant 0 : index
    %9 = vector.load %arg5[%c0_8, %c0_9] : memref<1x64xf32, #tpu.memory_space<vmem>>, vector<1x64xf32>
    %c0_10 = arith.constant 0 : index
    %c0_11 = arith.constant 0 : index
    %c0_12 = arith.constant 0 : index
    %10 = vector.load %arg6[%c0_10, %c0_11, %c0_12] : memref<4x64x128xf32, #tpu.memory_space<vmem>>, vector<4x64x128xf32>
    %cst_13 = arith.constant 0.000000e+00 : f32
    %11 = vector.broadcast %cst_13 : f32 to vector<8x128xf32>
    %12 = vector.extract_strided_slice %7 {offsets = [0, 0], sizes = [8, 128], strides = [1, 1]} : vector<8x512xf32> to vector<8x128xf32>
    %cst_14 = arith.constant dense<0.000000e+00> : vector<8x64xf32>
    %13 = tpu.matmul %12, %8, %cst_14 {dimension_numbers = #tpu.dot_dimension_numbers<[1], [0], [0], [1], [0, 0, 1, 1], [], []>} : vector<8x128xf32>, vector<128x64xf32>, vector<8x64xf32> -> vector<8x64xf32>
    %14 = vector.broadcast %9 : vector<1x64xf32> to vector<8x64xf32>
    %15 = arith.addf %13, %14 : vector<8x64xf32>
    %cst_15 = arith.constant 0.000000e+00 : f32
    %16 = vector.broadcast %cst_15 : f32 to vector<8x64xf32>
    %17 = arith.maximumf %15, %16 : vector<8x64xf32>
    %18 = vector.extract_strided_slice %10 {offsets = [0, 0, 0], sizes = [1, 64, 128], strides = [1, 1, 1]} : vector<4x64x128xf32> to vector<1x64x128xf32>
    %19 = vector.shape_cast %18 : vector<1x64x128xf32> to vector<64x128xf32>
    %cst_16 = arith.constant dense<0.000000e+00> : vector<8x128xf32>
    %20 = tpu.matmul %17, %19, %cst_16 {dimension_numbers = #tpu.dot_dimension_numbers<[1], [0], [0], [1], [0, 0, 1, 1], [], []>} : vector<8x64xf32>, vector<64x128xf32>, vector<8x128xf32> -> vector<8x128xf32>
    %21 = arith.addf %11, %20 : vector<8x128xf32>
    %22 = vector.extract_strided_slice %7 {offsets = [0, 128], sizes = [8, 128], strides = [1, 1]} : vector<8x512xf32> to vector<8x128xf32>
    %cst_17 = arith.constant dense<0.000000e+00> : vector<8x64xf32>
    %23 = tpu.matmul %22, %8, %cst_17 {dimension_numbers = #tpu.dot_dimension_numbers<[1], [0], [0], [1], [0, 0, 1, 1], [], []>} : vector<8x128xf32>, vector<128x64xf32>, vector<8x64xf32> -> vector<8x64xf32>
    %24 = vector.broadcast %9 : vector<1x64xf32> to vector<8x64xf32>
    %25 = arith.addf %23, %24 : vector<8x64xf32>
    %cst_18 = arith.constant 0.000000e+00 : f32
    %26 = vector.broadcast %cst_18 : f32 to vector<8x64xf32>
    %27 = arith.maximumf %25, %26 : vector<8x64xf32>
    %28 = vector.extract_strided_slice %10 {offsets = [1, 0, 0], sizes = [1, 64, 128], strides = [1, 1, 1]} : vector<4x64x128xf32> to vector<1x64x128xf32>
    %29 = vector.shape_cast %28 : vector<1x64x128xf32> to vector<64x128xf32>
    %cst_19 = arith.constant dense<0.000000e+00> : vector<8x128xf32>
    %30 = tpu.matmul %27, %29, %cst_19 {dimension_numbers = #tpu.dot_dimension_numbers<[1], [0], [0], [1], [0, 0, 1, 1], [], []>} : vector<8x64xf32>, vector<64x128xf32>, vector<8x128xf32> -> vector<8x128xf32>
    %31 = arith.addf %21, %30 : vector<8x128xf32>
    %32 = vector.extract_strided_slice %7 {offsets = [0, 256], sizes = [8, 128], strides = [1, 1]} : vector<8x512xf32> to vector<8x128xf32>
    %cst_20 = arith.constant dense<0.000000e+00> : vector<8x64xf32>
    %33 = tpu.matmul %32, %8, %cst_20 {dimension_numbers = #tpu.dot_dimension_numbers<[1], [0], [0], [1], [0, 0, 1, 1], [], []>} : vector<8x128xf32>, vector<128x64xf32>, vector<8x64xf32> -> vector<8x64xf32>
    %34 = vector.broadcast %9 : vector<1x64xf32> to vector<8x64xf32>
    %35 = arith.addf %33, %34 : vector<8x64xf32>
    %cst_21 = arith.constant 0.000000e+00 : f32
    %36 = vector.broadcast %cst_21 : f32 to vector<8x64xf32>
    %37 = arith.maximumf %35, %36 : vector<8x64xf32>
    %38 = vector.extract_strided_slice %10 {offsets = [2, 0, 0], sizes = [1, 64, 128], strides = [1, 1, 1]} : vector<4x64x128xf32> to vector<1x64x128xf32>
    %39 = vector.shape_cast %38 : vector<1x64x128xf32> to vector<64x128xf32>
    %cst_22 = arith.constant dense<0.000000e+00> : vector<8x128xf32>
    %40 = tpu.matmul %37, %39, %cst_22 {dimension_numbers = #tpu.dot_dimension_numbers<[1], [0], [0], [1], [0, 0, 1, 1], [], []>} : vector<8x64xf32>, vector<64x128xf32>, vector<8x128xf32> -> vector<8x128xf32>
    %41 = arith.addf %31, %40 : vector<8x128xf32>
    %42 = vector.extract_strided_slice %7 {offsets = [0, 384], sizes = [8, 128], strides = [1, 1]} : vector<8x512xf32> to vector<8x128xf32>
    %cst_23 = arith.constant dense<0.000000e+00> : vector<8x64xf32>
    %43 = tpu.matmul %42, %8, %cst_23 {dimension_numbers = #tpu.dot_dimension_numbers<[1], [0], [0], [1], [0, 0, 1, 1], [], []>} : vector<8x128xf32>, vector<128x64xf32>, vector<8x64xf32> -> vector<8x64xf32>
    %44 = vector.broadcast %9 : vector<1x64xf32> to vector<8x64xf32>
    %45 = arith.addf %43, %44 : vector<8x64xf32>
    %cst_24 = arith.constant 0.000000e+00 : f32
    %46 = vector.broadcast %cst_24 : f32 to vector<8x64xf32>
    %47 = arith.maximumf %45, %46 : vector<8x64xf32>
    %48 = vector.extract_strided_slice %10 {offsets = [3, 0, 0], sizes = [1, 64, 128], strides = [1, 1, 1]} : vector<4x64x128xf32> to vector<1x64x128xf32>
    %49 = vector.shape_cast %48 : vector<1x64x128xf32> to vector<64x128xf32>
    %cst_25 = arith.constant dense<0.000000e+00> : vector<8x128xf32>
    %50 = tpu.matmul %47, %49, %cst_25 {dimension_numbers = #tpu.dot_dimension_numbers<[1], [0], [0], [1], [0, 0, 1, 1], [], []>} : vector<8x64xf32>, vector<64x128xf32>, vector<8x128xf32> -> vector<8x128xf32>
    %51 = arith.addf %41, %50 : vector<8x128xf32>
    %c0_26 = arith.constant 0 : index
    %c0_27 = arith.constant 0 : index
    %52 = vector.load %arg7[%c0_26, %c0_27] : memref<1x128xf32, #tpu.memory_space<vmem>>, vector<1x128xf32>
    %53 = vector.broadcast %52 : vector<1x128xf32> to vector<8x128xf32>
    %54 = arith.addf %51, %53 : vector<8x128xf32>
    %c0_28 = arith.constant 0 : index
    %c0_29 = arith.constant 0 : index
    %55 = vector.load %arg8[%c0_28, %c0_29] : memref<8x128xf32, #tpu.memory_space<vmem>>, vector<8x128xf32>
    tpu.vector_store %arg8[%c0_28, %c0_29], %54 {strides = array<i32>} : memref<8x128xf32, #tpu.memory_space<vmem>>, vector<8x128xf32>,
    return
  }
  func.func @transform_0(%arg0: i32) -> (i32, i32) {
    %c0_i32 = arith.constant 0 : i32
    %c0_i32_0 = arith.constant 0 : i32
    return %arg0, %c0_i32 : i32, i32
  }
  func.func @transform_1(%arg0: i32) -> (i32, i32) {
    %c0_i32 = arith.constant 0 : i32
    %c0_i32_0 = arith.constant 0 : i32
    %c0_i32_1 = arith.constant 0 : i32
    return %c0_i32, %c0_i32_0 : i32, i32
  }
  func.func @transform_2(%arg0: i32) -> (i32, i32) {
    %c0_i32 = arith.constant 0 : i32
    %c0_i32_0 = arith.constant 0 : i32
    %c0_i32_1 = arith.constant 0 : i32
    return %c0_i32, %c0_i32_0 : i32, i32
  }
  func.func @transform_3(%arg0: i32) -> (i32, i32) {
    %c0_i32 = arith.constant 0 : i32
    %c0_i32_0 = arith.constant 0 : i32
    %c0_i32_1 = arith.constant 0 : i32
    return %c0_i32, %c0_i32_0 : i32, i32
  }
  func.func @transform_4(%arg0: i32) -> (i32, i32) {
    %c0_i32 = arith.constant 0 : i32
    %c0_i32_0 = arith.constant 0 : i32
    %c0_i32_1 = arith.constant 0 : i32
    return %c0_i32, %c0_i32_0 : i32, i32
  }
  func.func @transform_5(%arg0: i32) -> (i32, i32, i32) {
    %c0_i32 = arith.constant 0 : i32
    %c0_i32_0 = arith.constant 0 : i32
    %c0_i32_1 = arith.constant 0 : i32
    %c0_i32_2 = arith.constant 0 : i32
    return %c0_i32, %c0_i32_0, %c0_i32_1 : i32, i32, i32
  }
  func.func @transform_6(%arg0: i32) -> (i32, i32) {
    %c0_i32 = arith.constant 0 : i32
    %c0_i32_0 = arith.constant 0 : i32
    %c0_i32_1 = arith.constant 0 : i32
    return %c0_i32, %c0_i32_0 : i32, i32
  }
  func.func @transform_7(%arg0: i32) -> (i32, i32) {
    %c0_i32 = arith.constant 0 : i32
    %c0_i32_0 = arith.constant 0 : i32
    return %arg0, %c0_i32 : i32, i32
  }
}

</mosaic_0001>

<bundles_post_ra>
// kernel: tpu_custom_call.1
= control target key start
LH: loop header
LB: loop body
LE: loop exit
PB: predicated region body
PF: predicated region fallthrough
CT: control target
= control target key end

     0   :  { %12 = vsyncpa [#allocation3], 0  ;;  %s714_s0 = inlined_call_operand.vmem [shape: f32[8,16], index: 0, kind: input, shape index: {}]   ;;  %s715_s1 = inlined_call_operand.vmem [shape: f32[16,512], index: 1, kind: input, shape index: {}]   ;;  %s716_s2 = inlined_call_operand.vmem [shape: f32[1,512], index: 2, kind: input, shape index: {}]   ;;  %s717_s3 = inlined_call_operand.vmem [shape: f32[128,64], index: 3, kind: input, shape index: {}]   ;;  %s718_s4 = inlined_call_operand.vmem [shape: f32[1,64], index: 4, kind: input, shape index: {}]   ;;  %s719_s5 = inlined_call_operand.hbm [shape: f32[4,64,128], index: 5, kind: input, shape index: {}]   ;;  %s720_s6 = inlined_call_operand.vmem [shape: f32[1,128], index: 6, kind: input, shape index: {}]   ;;  %s721_s7 = inlined_call_operand.hbm [shape: f32[8,128], index: 7, kind: output, shape index: {}]  }
   0x1   :  { %13 = vsyncpa [#allocation4], 0  ;;  %s28_s26 = sshll.u32 %s719_s5, 4  ;;  %s470_s27 = smov [#allocation2]   ;;  %s29_s26 = int_to_ptr.hbm [resolvable:$true] %s28_s26 }
   0x2   :  { %s30_s28 = sshll.u32 %s470_s27, 4  ;;  %s471_s29 = smov 128   ;;  %s31_s28 = int_to_ptr.vmem [resolvable:$true] %s30_s28 }
   0x3   :  { %s472_s30 = smov 8  }
   0x4   :  { %36 = dma.hbm_to_vmem [thread:$0]  %s29_s26, 4096, %s31_s28, [#allocation3], %s471_s29, %s471_s29, %s472_s30  }
   0x5   :  { %466 = dma.done.wait [#allocation3], 4096  }
   0x6   :  { %467 = vsyncadd [#allocation3], 4294963200  ;;  %v48_v0 = vld [vmem:[%s715_s1 + $0x20] sm:$0xff]  ;;  %v49_v1 = vld [vmem:[%s715_s1 + $0x28] sm:$0xff]  ;;  %vm62_vm0 = vcmask 130048   ;;  %vm244_vm1 = vcmask 523264  }
   0x7   :  { %v44_v2 = vld [vmem:[%s715_s1] sm:$0xff]  ;;  %80 = vmatpush.msra.mxu3 %v48_v0  ;;  %100 = vmatpush.msra.mxu1 %v49_v1  ;;  %v45_v3 = vld [vmem:[%s715_s1 + $0x8] sm:$0xff]  ;;  %v537_v5 = vld [vmem:[%s717_s3 + $0x78] sm:$0xff]  ;;  %s473_s10 = smov [#allocation5]   ;;  %s394_s5 = sshll.u32 %s721_s7, 4  ;;  %s395_s5 = int_to_ptr.hbm [resolvable:$true] %s394_s5 }
   0x8   :  { %v532_v4 = vld [vmem:[%s714_s0] sm:$0xff]  ;;  %202 = vmatpush.msra.mxu0 %v537_v5  ;;  %v547_v6 = vld [vmem:[%s717_s3 + $0x70] sm:$0xff]  ;;  %v554_v7 = vld [vmem:[%s717_s3 + $0x68] sm:$0xff]  ;;  %s392_s11 = sshll.u32 %s473_s10, 4  ;;  %s393_s11 = int_to_ptr.vmem [resolvable:$true] %s392_s11 }
   0x9   :  { %81 = vmatpush.msra.mxu3 %v44_v2  ;;  %101 = vmatpush.msra.mxu1 %v45_v3  ;;  %v561_v8 = vld [vmem:[%s717_s3 + $0x60] sm:$0xff]  ;;  %v568_v9 = vld [vmem:[%s717_s3 + $0x58] sm:$0xff]  ;;  %v575_v10 = vld [vmem:[%s717_s3 + $0x50] sm:$0xff] }
   0xa   :  { %404 = vmatmul.msk.f32.vlgmr.msra.gmra.mxu3 %vm62_vm0, %v532_v4  ;;  %405 = vmatmul.msk.f32.vlgmr.msra.gmra.mxu1 %vm62_vm0, %v532_v4  ;;  %v582_v11 = vld [vmem:[%s717_s3 + $0x48] sm:$0xff]  ;;  %v589_v12 = vld [vmem:[%s717_s3 + $0x40] sm:$0xff]  ;;  %v596_v13 = vld [vmem:[%s717_s3 + $0x38] sm:$0xff] }
   0xb   :  { %223 = vmatpush.msrb.mxu1 %v537_v5  ;;  %203 = vmatpush.msra.mxu0 %v547_v6  ;;  %v603_v14 = vld [vmem:[%s717_s3 + $0x30] sm:$0xff]  ;;  %v610_v15 = vld [vmem:[%s717_s3 + $0x28] sm:$0xff]  ;;  %v617_v16 = vld [vmem:[%s717_s3 + $0x20] sm:$0xff] }
   0xc   :  { %v624_v17 = vld [vmem:[%s717_s3 + $0x18] sm:$0xff]  ;;  %v632_v18 = vld [vmem:[%s717_s3 + $0x10] sm:$0xff]  ;;  %v639_v19 = vld [vmem:[%s717_s3 + $0x8] sm:$0xff] }
   0xd   :  { %224 = vmatpush.msrb.mxu1 %v547_v6  ;;  %204 = vmatpush.msra.mxu0 %v554_v7  ;;  %v50_v20 = vld [vmem:[%s715_s1 + $0x30] sm:$0xff]  ;;  %v649_v21 = vld [vmem:[%s717_s3] sm:$0xff]  ;;  %v51_v23 = vld [vmem:[%s715_s1 + $0x38] sm:$0xff] }
   0xe   :  { %120 = vmatpush.msra.mxu2 %v50_v20  ;;  %v46_v22 = vld [vmem:[%s715_s1 + $0x10] sm:$0xff]  ;;  %v47_v24 = vld [vmem:[%s715_s1 + $0x18] sm:$0xff]  ;;  %140 = vmatpush.msrb.mxu3 %v51_v23  ;;  %v180_v27 = vld [vmem:[#allocation2 + $0x68] sm:$0xff] }
   0xf   :  { %225 = vmatpush.msrb.mxu1 %v554_v7  ;;  %205 = vmatpush.msra.mxu0 %v561_v8  ;;  %v182_v25 = vld [vmem:[#allocation2 + $0x78] sm:$0xff]  ;;  %v181_v26 = vld [vmem:[#allocation2 + $0x70] sm:$0xff]  ;;  %v179_v29 = vld [vmem:[#allocation2 + $0x60] sm:$0xff] }
  0x10   :  { %121 = vmatpush.msra.mxu2 %v46_v22  ;;  %141 = vmatpush.msrb.mxu3 %v47_v24  ;;  %v174_v28 = vld [vmem:[#allocation2 + $0x38] sm:$0xff]  ;;  %v173_v30 = vld [vmem:[#allocation2 + $0x30] sm:$0xff]  ;;  %v176_v33 = vld [vmem:[#allocation2 + $0x48] sm:$0xff] }
  0x11   :  { %226 = vmatpush.msrb.mxu1 %v561_v8  ;;  %206 = vmatpush.msra.mxu0 %v568_v9  ;;  %v178_v31 = vld [vmem:[#allocation2 + $0x58] sm:$0xff]  ;;  %v177_v32 = vld [vmem:[#allocation2 + $0x50] sm:$0xff]  ;;  %v175_v34 = vld [vmem:[#allocation2 + $0x40] sm:$0xff] }
  0x12   :  { %406 = vmatmul.msk.f32.vlgmr.msra.gmra.mxu2 %vm62_vm0, %v532_v4  ;;  %407 = vmatmul.msk.f32.vlgmr.msrb.gmra.mxu3 %vm62_vm0, %v532_v4  ;;  %v52_v35 = vld [vmem:[%s716_s2] sm:$0xf]  ;;  %v172_v44 = vld [vmem:[#allocation2 + $0x28] sm:$0xff]  ;;  %v170_v46 = vld [vmem:[#allocation2 + $0x18] sm:$0xff] }
  0x13   :  { %227 = vmatpush.msrb.mxu1 %v568_v9  ;;  %207 = vmatpush.msra.mxu0 %v575_v10  ;;  %v55_v36 = vperm.slane %v52_v35, 1  ;;  %v54_v40 = vperm.slane %v52_v35, 0  ;;  %v171_v45 = vld [vmem:[#allocation2 + $0x20] sm:$0xff]  ;;  %v169_v47 = vld [vmem:[#allocation2 + $0x10] sm:$0xff]  ;;  %v168_v48 = vld [vmem:[#allocation2 + $0x8] sm:$0xff]  ;;  %v57_v50 = vperm.slane %v52_v35, 3 }
  0x14   :  { %256 = vmatpush.msrb.mxu2 %v182_v25  ;;  %279 = vmatpush.msra.mxu3 %v174_v28  ;;  %v167_v49 = vld [vmem:[#allocation2] sm:$0xff]  ;;  %v190_v51 = vld [vmem:[#allocation2 + $0xb8] sm:$0xff]  ;;  %v56_v58 = vperm.slane %v52_v35, 2  ;;  %v189_v2 = vld [vmem:[#allocation2 + $0xb0] sm:$0xff] }
  0x15   :  { %228 = vmatpush.msrb.mxu1 %v575_v10  ;;  %208 = vmatpush.msra.mxu0 %v582_v11  ;;  %v416_v55 = vld [vmem:[%s718_s4] ss:$0 sm:$0xff]  ;;  %v188_v3 = vld [vmem:[#allocation2 + $0xa8] sm:$0xff] }
  0x16   :  { %257 = vmatpush.msrb.mxu2 %v181_v26  ;;  %280 = vmatpush.msra.mxu3 %v173_v30  ;;  %v187_v4 = vld [vmem:[#allocation2 + $0xa0] sm:$0xff] }
  0x17   :  { %229 = vmatpush.msrb.mxu1 %v582_v11  ;;  %209 = vmatpush.msra.mxu0 %v589_v12 }
  0x18   :  { %258 = vmatpush.msrb.mxu2 %v180_v27  ;;  %281 = vmatpush.msra.mxu3 %v172_v44 }
  0x19   :  { %230 = vmatpush.msrb.mxu1 %v589_v12  ;;  %210 = vmatpush.msra.mxu0 %v596_v13 }
  0x1a   :  { %259 = vmatpush.msrb.mxu2 %v179_v29  ;;  %282 = vmatpush.msra.mxu3 %v171_v45  ;;  %v417_v29 = vld [vmem:[%s720_s6] ss:$0 sm:$0xff] }
  0x1b   :  { %231 = vmatpush.msrb.mxu1 %v596_v13  ;;  %211 = vmatpush.msra.mxu0 %v603_v14 }
  0x1c   :  { %260 = vmatpush.msrb.mxu2 %v178_v31  ;;  %283 = vmatpush.msra.mxu3 %v170_v46 }
  0x1d   :  { %232 = vmatpush.msrb.mxu1 %v603_v14  ;;  %212 = vmatpush.msra.mxu0 %v610_v15 }
  0x1e   :  { %261 = vmatpush.msrb.mxu2 %v177_v32  ;;  %284 = vmatpush.msra.mxu3 %v169_v47 }
  0x1f   :  { %233 = vmatpush.msrb.mxu1 %v610_v15  ;;  %213 = vmatpush.msra.mxu0 %v617_v16 }
  0x20   :  { %262 = vmatpush.msrb.mxu2 %v176_v33  ;;  %285 = vmatpush.msra.mxu3 %v168_v48 }
  0x21   :  { %234 = vmatpush.msrb.mxu1 %v617_v16  ;;  %214 = vmatpush.msra.mxu0 %v624_v17 }
  0x22   :  { %263 = vmatpush.msrb.mxu2 %v175_v34  ;;  %286 = vmatpush.msra.mxu3 %v167_v49 }
  0x23   :  { %235 = vmatpush.msrb.mxu1 %v624_v17  ;;  %215 = vmatpush.msra.mxu0 %v632_v18 }
  0x24   :  { %291 = vmatpush.msra.mxu2 %v537_v5  ;;  %323 = vmatpush.msrb.mxu3 %v190_v51 }
  0x25   :  { %236 = vmatpush.msrb.mxu1 %v632_v18  ;;  %216 = vmatpush.msra.mxu0 %v639_v19 }
  0x26   :  { %292 = vmatpush.msra.mxu2 %v547_v6  ;;  %324 = vmatpush.msrb.mxu3 %v189_v2 }
  0x27   :  { %237 = vmatpush.msrb.mxu1 %v639_v19  ;;  %217 = vmatpush.msra.mxu0 %v649_v21 }
  0x28   :  { %293 = vmatpush.msra.mxu2 %v554_v7  ;;  %325 = vmatpush.msrb.mxu3 %v188_v3 }
  0x29   :  { %238 = vmatpush.msrb.mxu1 %v649_v21  ;;  %336 = vmatpush.msrb.mxu0 %v537_v5  ;;  %v186_v5 = vld [vmem:[#allocation2 + $0x98] sm:$0xff] }
  0x2a   :  { %294 = vmatpush.msra.mxu2 %v561_v8  ;;  %326 = vmatpush.msrb.mxu3 %v187_v4 }
  0x2b   :  { %337 = vmatpush.msrb.mxu0 %v547_v6  ;;  %v198_v6 = vld [vmem:[#allocation2 + $0xf8] sm:$0xff] }
  0x2c   :  { %295 = vmatpush.msra.mxu2 %v568_v9  ;;  %327 = vmatpush.msrb.mxu3 %v186_v5 }
  0x2d   :  { %338 = vmatpush.msrb.mxu0 %v554_v7  ;;  %368 = vmatpush.msra.mxu1 %v198_v6  ;;  %v185_v7 = vld [vmem:[#allocation2 + $0x90] sm:$0xff] }
  0x2e   :  { %296 = vmatpush.msra.mxu2 %v575_v10  ;;  %328 = vmatpush.msrb.mxu3 %v185_v7 }
  0x2f   :  { %339 = vmatpush.msrb.mxu0 %v561_v8  ;;  %v197_v8 = vld [vmem:[#allocation2 + $0xf0] sm:$0xff] }
  0x30   :  { %297 = vmatpush.msra.mxu2 %v582_v11  ;;  %369 = vmatpush.msra.mxu1 %v197_v8 }
  0x31   :  { %340 = vmatpush.msrb.mxu0 %v568_v9  ;;  %v184_v9 = vld [vmem:[#allocation2 + $0x88] sm:$0xff] }
  0x32   :  { %298 = vmatpush.msra.mxu2 %v589_v12  ;;  %329 = vmatpush.msrb.mxu3 %v184_v9 }
  0x33   :  { %341 = vmatpush.msrb.mxu0 %v575_v10  ;;  %v196_v10 = vld [vmem:[#allocation2 + $0xe8] sm:$0xff] }
  0x34   :  { %299 = vmatpush.msra.mxu2 %v596_v13  ;;  %370 = vmatpush.msra.mxu1 %v196_v10 }
  0x35   :  { %342 = vmatpush.msrb.mxu0 %v582_v11  ;;  %v183_v11 = vld [vmem:[#allocation2 + $0x80] sm:$0xff] }
  0x36   :  { %300 = vmatpush.msra.mxu2 %v603_v14  ;;  %330 = vmatpush.msrb.mxu3 %v183_v11 }
  0x37   :  { %343 = vmatpush.msrb.mxu0 %v589_v12  ;;  %v195_v12 = vld [vmem:[#allocation2 + $0xe0] sm:$0xff] }
  0x38   :  { %301 = vmatpush.msra.mxu2 %v610_v15  ;;  %371 = vmatpush.msra.mxu1 %v195_v12 }
  0x39   :  { %344 = vmatpush.msrb.mxu0 %v596_v13  ;;  %v194_v13 = vld [vmem:[#allocation2 + $0xd8] sm:$0xff] }
  0x3a   :  { %302 = vmatpush.msra.mxu2 %v617_v16  ;;  %372 = vmatpush.msra.mxu1 %v194_v13 }
  0x3b   :  { %345 = vmatpush.msrb.mxu0 %v603_v14 }
  0x3c   :  { %303 = vmatpush.msra.mxu2 %v624_v17 }
  0x3d   :  { %346 = vmatpush.msrb.mxu0 %v610_v15  ;;  %v193_v15 = vld [vmem:[#allocation2 + $0xd0] sm:$0xff] }
  0x3e   :  { %304 = vmatpush.msra.mxu2 %v632_v18  ;;  %373 = vmatpush.msra.mxu1 %v193_v15 }
  0x3f   :  { %347 = vmatpush.msrb.mxu0 %v617_v16 }
  0x40   :  { %305 = vmatpush.msra.mxu2 %v639_v19 }
  0x41   :  { %348 = vmatpush.msrb.mxu0 %v624_v17  ;;  %v192_v17 = vld [vmem:[#allocation2 + $0xc8] sm:$0xff] }
  0x42   :  { %306 = vmatpush.msra.mxu2 %v649_v21  ;;  %374 = vmatpush.msra.mxu1 %v192_v17 }
  0x43   :  { %349 = vmatpush.msrb.mxu0 %v632_v18 }
  0x45   :  { %350 = vmatpush.msrb.mxu0 %v639_v19  ;;  %v191_v19 = vld [vmem:[#allocation2 + $0xc0] sm:$0xff] }
  0x46   :  { %375 = vmatpush.msra.mxu1 %v191_v19 }
  0x47   :  { %351 = vmatpush.msrb.mxu0 %v649_v21 }
  0x87   :  { %v103_v37 = vpop.f32.mrf.mxu1 }
  0x88   :  { %v104_v38 = vadd.f32 %v103_v37, %v55_v36 }
  0x8a   :  { %v147_v39 = vmax.f32 %v104_v38, 0.0 }
  0x8c   :  { %239 = vmatmul.f32.vlgmr.msrb.gmra.mxu1 %v147_v39 }
  0x8d   :  { %v83_v41 = vpop.f32.mrf.mxu3 }
  0x8e   :  { %v84_v42 = vadd.f32 %v83_v41, %v54_v40 }
  0x90   :  { %v146_v43 = vmax.f32 %v84_v42, 0.0 }
  0x92   :  { %218 = vmatmul.f32.vlgmr.msra.gmra.mxu0 %v146_v43 }
  0x95   :  { %v143_v52 = vpop.f32.mrf.mxu3  ;;  %v123_v59 = vpop.f32.mrf.mxu2 }
  0x96   :  { %v144_v53 = vadd.f32 %v143_v52, %v57_v50  ;;  %v124_v61 = vadd.f32 %v123_v59, %v56_v58 }
  0x98   :  { %v149_v54 = vmax.f32 %v144_v53, 0.0  ;;  %v148_v1 = vmax.f32 %v124_v61, 0.0 }
  0x9a   :  { %352 = vmatmul.f32.vlgmr.msrb.gmra.mxu0 %v149_v54 }
 0x109   :  { %v240_v56 = vpop.f32.mrf.mxu1 }
 0x10a   :  { %v241_v57 = vadd.f32 %v416_v55, %v240_v56 }
 0x10c   :  { %v243_v60 = vmax.f32 %v241_v57, 0.0 }
 0x10e   :  { %408 = vmatmul.msk.f32.vlgmr.msrb.gmra.mxu2 %vm244_vm1, %v243_v60 }
 0x10f   :  { %v219_v62 = vpop.f32.mrf.mxu0 }
 0x110   :  { %v220_v63 = vadd.f32 %v416_v55, %v219_v62 }
 0x112   :  { %v222_v0 = vmax.f32 %v220_v63, 0.0 }
 0x114   :  { %409 = vmatmul.msk.f32.vlgmr.msra.gmra.mxu3 %vm244_vm1, %v222_v0 }
 0x116   :  { %307 = vmatmul.f32.vlgmr.msra.gmra.mxu2 %v148_v1 }
 0x117   :  { %v353_v14 = vpop.f32.mrf.mxu0 }
 0x118   :  { %v354_v16 = vadd.f32 %v416_v55, %v353_v14 }
 0x11a   :  { %v356_v18 = vmax.f32 %v354_v16, 0.0 }
 0x11c   :  { %411 = vmatmul.msk.f32.vlgmr.msra.gmra.mxu1 %vm244_vm1, %v356_v18 }
 0x191   :  { %v265_v20 = vpop.f32.mrf.mxu2 }
 0x197   :  { %v288_v24 = vpop.f32.mrf.mxu3 }
 0x198   :  { %v289_v25 = vadd.f32 %v288_v24, %v265_v20 }
 0x199   :  { %v308_v21 = vpop.f32.mrf.mxu2  ;;  %v377_v27 = vpop.f32.mrf.mxu1 }
 0x19a   :  { %v309_v22 = vadd.f32 %v416_v55, %v308_v21 }
 0x19c   :  { %v311_v23 = vmax.f32 %v309_v22, 0.0 }
 0x19e   :  { %410 = vmatmul.msk.f32.vlgmr.msrb.gmra.mxu3 %vm244_vm1, %v311_v23 }
 0x221   :  { %v332_v26 = vpop.f32.mrf.mxu3 }
 0x222   :  { %v335_v28 = vadd.f32 %v332_v26, %v289_v25 }
 0x224   :  { %v380_v30 = vadd.f32 %v377_v27, %v335_v28 }
 0x226   :  { %v385_v31 = vadd.f32 %v417_v29, %v380_v30 }
 0x228   :  { %386 = vst [vmem:[#allocation5] sm:$0xff] %v385_v31 }
 0x229   :  { %397 = dma.vmem_to_hbm [thread:$0]  %s393_s11, 128, %s395_s5, [#allocation4]  }
 0x22a   :  { %468 = dma.done.wait [#allocation4], 128  }
 0x22b   :  { %469 = vsyncadd [#allocation4], 4294967168 }
 0x22c   :  { %402 = vsyncpa [#allocation3], 1 }
 0x22d   :  { %403 = vsyncpa [#allocation4], 1 }

</bundles_post_ra>
